<compile_context>
chip_gen: v7x
topology: tpu7x:2x2x1
jax: 0.10.0
libtpu: 0.0.40
codegen_flags: <defaults>
</compile_context>

<pallas_src>
import jax
import jax.numpy as jnp
from jax import lax
from jax.experimental import pallas as pl
from jax.experimental.pallas import tpu as pltpu

_LANE = 128
_TM_MAX = 4096            # 4096 x 128 x 4 B = 2 MiB per f32 block
_TM_MIN = 512             # measured elementwise roofline drops fast below ~512-row blocks
_VMEM_LIMIT_BYTES = 32 * 1024 * 1024

# Abramowitz & Stegun 7.1.26 erf approximation constants (|err| <= 1.5e-7).
_SQRT1_2 = 0.7071067811865476
_AS_P = 0.3275911
_AS_A1 = 0.254829592
_AS_A2 = -0.284496736
_AS_A3 = 1.421413741
_AS_A4 = -1.453152027
_AS_A5 = 1.061405429


def _num_tensorcores():
    """TensorCores sharing a 'parallel' grid axis (v7x / megacore v4, v5p = 2)."""
    try:
        kind = jax.devices()[0].device_kind.lower()
    except Exception:
        return 1
    if ("v7" in kind) or ("v4" in kind) or ("v5p" in kind):
        return 2
    return 1


_CORES = _num_tensorcores()


def _gelu_kernel(x_ref, o_ref):
    x = x_ref[...].astype(jnp.float32)
    # erf via A&S 7.1.26: the exp goes to the EUP slot (nearly free) instead of
    # the ~25-op VALU polynomial XLA emits for lax.erf.  GELU abs error is
    # ~0.5*|x|*1.5e-7, far inside the 1e-5 tolerance.  Swap back to
    # `lax.erf(x * _SQRT1_2)` if bit-matching torch's exact erf is required.
    z = jnp.abs(x) * _SQRT1_2
    t = 1.0 / (1.0 + _AS_P * z)   # accurate reciprocal (approx=True would eat the budget)
    poly = ((((_AS_A5 * t + _AS_A4) * t + _AS_A3) * t + _AS_A2) * t + _AS_A1) * t
    erf_abs = 1.0 - poly * jnp.exp(-z * z)
    erf = jnp.where(x < 0.0, -erf_abs, erf_abs)
    y = 0.5 * x * (1.0 + erf)
    o_ref[...] = y.astype(o_ref.dtype)


def _sublane_multiple(dtype):
    # Packed sublane tile: 8 for 4-byte, 16 for bf16, 32 for int8/fp8.
    return max(8, 32 // jnp.dtype(dtype).itemsize)


def _choose_tm(rows, dtype):
    """Pick a block height: as large as possible, aligned, with just enough
    grid steps for pipeline overlap (and core balance on 2-TC chips)."""
    sub = _sublane_multiple(dtype)
    if rows <= _TM_MIN:
        return rows                                   # block == full slab (always legal)
    tm = max(sub, min(_TM_MAX, (rows // sub) * sub))  # biggest aligned block, capped
    steps = -(-rows // tm)
    min_steps = 3 if _CORES == 1 else 2 * _CORES
    if steps < min_steps:
        # Split for DMA/compute overlap, but never below the efficiency floor.
        tm = -(-rows // min_steps)
        tm = max(_TM_MIN, ((tm + sub - 1) // sub) * sub)
    elif _CORES > 1 and steps % _CORES != 0:
        # Balance the grid across TensorCores.
        steps = ((steps + _CORES - 1) // _CORES) * _CORES
        tm = max(_TM_MIN, ((-(-rows // steps) + sub - 1) // sub) * sub)
    return min(tm, rows)


def _run_2d(x2d):
    """Run the elementwise kernel over a lane-dense (rows, 128) slab."""
    rows, lane = x2d.shape
    tm = _choose_tm(rows, x2d.dtype)
    grid = (pl.cdiv(rows, tm),)                       # partial trailing block is OK
    # TODO(synk): optional lane-widening (reshape to (n/1024, 1024)) is a small,
    # measure-first win; skipped to keep block selection simple.
    return pl.pallas_call(
        _gelu_kernel,
        out_shape=jax.ShapeDtypeStruct((rows, lane), x2d.dtype),
        grid=grid,
        in_specs=[pl.BlockSpec((tm, lane), lambda i: (i, 0))],
        out_specs=pl.BlockSpec((tm, lane), lambda i: (i, 0)),
        compiler_params=pltpu.CompilerParams(
            dimension_semantics=("parallel",),
            vmem_limit_bytes=_VMEM_LIMIT_BYTES),
    )(x2d)


@jax.jit
def gelu_pallas(x):
    orig_shape = x.shape
    n = x.size

    if n % _LANE == 0:
        # Fast path: free reshape to a lane-dense slab, zero extra copies.
        rows = n // _LANE
        out2d = _run_2d(x.reshape(rows, _LANE))
        return out2d.reshape(orig_shape)

    # Ragged path: process the 128-aligned bulk directly; only the <128-elem
    # tail is padded into one small (8, 128) block (GELU(0)=0, sliced off).
    x_flat = x.reshape(-1)
    bulk = (n // _LANE) * _LANE
    tail_len = n - bulk
    tail = jnp.zeros((8 * _LANE,), x.dtype).at[:tail_len].set(x_flat[bulk:])
    tail_out = _run_2d(tail.reshape(8, _LANE)).reshape(-1)[:tail_len]
    if bulk:
        bulk_out = _run_2d(x_flat[:bulk].reshape(bulk // _LANE, _LANE)).reshape(-1)
        # Assemble without jnp.concatenate (per review); XLA fuses the fill +
        # both updates into a single output pass.
        # TODO(synk): a fully single-pass ragged path needs a masked 1-D
        # trailing block (or manual DMA) writing directly into an (n,) output.
        out_flat = jnp.zeros((n,), x.dtype)
        out_flat = lax.dynamic_update_slice(out_flat, bulk_out, (0,))
        out_flat = lax.dynamic_update_slice(out_flat, tail_out, (bulk,))
    else:
        out_flat = tail_out
    return out_flat.reshape(orig_shape)


if __name__ == "__main__":
    key = jax.random.PRNGKey(0)
    # NCHW input consistent with a typical conv feature map.
    x = jax.random.normal(key, (2, 4, 16, 16), dtype=jnp.float32)

    out = gelu_pallas(x)
    jax.block_until_ready(out)

    ref = jax.nn.gelu(x, approximate=False)
    assert out.shape == x.shape and out.dtype == x.dtype
    assert jnp.max(jnp.abs(out - ref)) < 1e-5

    # Also exercise a ragged shape (element count not a multiple of 128).
    x2 = jax.random.normal(jax.random.PRNGKey(1), (3, 5, 7), dtype=jnp.float32)
    out2 = gelu_pallas(x2)
    jax.block_until_ready(out2)
    assert jnp.max(jnp.abs(out2 - jax.nn.gelu(x2, approximate=False))) < 1e-5

    print("KERNEL_OK")
</pallas_src>

<mosaic_0001>
module attributes {stable_mosaic.version = 11 : i64} {
  func.func @_gelu_kernel(%arg0: i32, %arg1: memref<16x128xf32, #tpu.memory_space<vmem>>, %arg2: memref<16x128xf32, #tpu.memory_space<vmem>>) attributes {dimension_semantics = [#tpu.dimension_semantics<parallel>], iteration_bounds = array<i64: 1>, scalar_prefetch = 0 : i64, scratch_operands = 0 : i64, tpu.core_type = #tpu.core_type<tc>, window_params = [{transform_indices = @transform_0, window_bounds = array<i64: 16, 128>}, {transform_indices = @transform_1, window_bounds = array<i64: 16, 128>}]} {
    %c0 = arith.constant 0 : index
    %c0_0 = arith.constant 0 : index
    %0 = vector.load %arg1[%c0, %c0_0] : memref<16x128xf32, #tpu.memory_space<vmem>>, vector<16x128xf32>
    %1 = math.absf %0 : vector<16x128xf32>
    %cst = arith.constant 0.707106769 : f32
    %2 = vector.broadcast %cst : f32 to vector<16x128xf32>
    %3 = arith.mulf %1, %2 : vector<16x128xf32>
    %cst_1 = arith.constant 0.327591091 : f32
    %4 = vector.broadcast %cst_1 : f32 to vector<16x128xf32>
    %5 = arith.mulf %4, %3 : vector<16x128xf32>
    %cst_2 = arith.constant 1.000000e+00 : f32
    %6 = vector.broadcast %cst_2 : f32 to vector<16x128xf32>
    %7 = arith.addf %6, %5 : vector<16x128xf32>
    %cst_3 = arith.constant 1.000000e+00 : f32
    %8 = vector.broadcast %cst_3 : f32 to vector<16x128xf32>
    %9 = arith.divf %8, %7 : vector<16x128xf32>
    %cst_4 = arith.constant 1.06140542 : f32
    %10 = vector.broadcast %cst_4 : f32 to vector<16x128xf32>
    %11 = arith.mulf %10, %9 : vector<16x128xf32>
    %cst_5 = arith.constant -1.45315206 : f32
    %12 = vector.broadcast %cst_5 : f32 to vector<16x128xf32>
    %13 = arith.addf %11, %12 : vector<16x128xf32>
    %14 = arith.mulf %13, %9 : vector<16x128xf32>
    %cst_6 = arith.constant 1.42141378 : f32
    %15 = vector.broadcast %cst_6 : f32 to vector<16x128xf32>
    %16 = arith.addf %14, %15 : vector<16x128xf32>
    %17 = arith.mulf %16, %9 : vector<16x128xf32>
    %cst_7 = arith.constant -0.284496725 : f32
    %18 = vector.broadcast %cst_7 : f32 to vector<16x128xf32>
    %19 = arith.addf %17, %18 : vector<16x128xf32>
    %20 = arith.mulf %19, %9 : vector<16x128xf32>
    %cst_8 = arith.constant 0.254829586 : f32
    %21 = vector.broadcast %cst_8 : f32 to vector<16x128xf32>
    %22 = arith.addf %20, %21 : vector<16x128xf32>
    %23 = arith.mulf %22, %9 : vector<16x128xf32>
    %cst_9 = arith.constant 0.000000e+00 : f32
    %24 = vector.broadcast %cst_9 : f32 to vector<16x128xf32>
    %25 = arith.subf %24, %3 : vector<16x128xf32>
    %26 = arith.mulf %25, %3 : vector<16x128xf32>
    %27 = math.exp %26 : vector<16x128xf32>
    %28 = arith.mulf %23, %27 : vector<16x128xf32>
    %cst_10 = arith.constant 1.000000e+00 : f32
    %29 = vector.broadcast %cst_10 : f32 to vector<16x128xf32>
    %30 = arith.subf %29, %28 : vector<16x128xf32>
    %cst_11 = arith.constant 0.000000e+00 : f32
    %31 = vector.broadcast %cst_11 : f32 to vector<16x128xf32>
    %32 = arith.cmpf olt, %0, %31 : vector<16x128xf32>
    %cst_12 = arith.constant 0.000000e+00 : f32
    %33 = vector.broadcast %cst_12 : f32 to vector<16x128xf32>
    %34 = arith.subf %33, %30 : vector<16x128xf32>
    %35 = arith.select %32, %34, %30 : vector<16x128xi1>, vector<16x128xf32>
    %cst_13 = arith.constant 5.000000e-01 : f32
    %36 = vector.broadcast %cst_13 : f32 to vector<16x128xf32>
    %37 = arith.mulf %36, %0 : vector<16x128xf32>
    %cst_14 = arith.constant 1.000000e+00 : f32
    %38 = vector.broadcast %cst_14 : f32 to vector<16x128xf32>
    %39 = arith.addf %38, %35 : vector<16x128xf32>
    %40 = arith.mulf %37, %39 : vector<16x128xf32>
    %c0_15 = arith.constant 0 : index
    %c0_16 = arith.constant 0 : index
    %41 = vector.load %arg2[%c0_15, %c0_16] : memref<16x128xf32, #tpu.memory_space<vmem>>, vector<16x128xf32>
    tpu.vector_store %arg2[%c0_15, %c0_16], %40 {strides = array<i32>} : memref<16x128xf32, #tpu.memory_space<vmem>>, vector<16x128xf32>,
    return
  }
  func.func @transform_0(%arg0: i32) -> (i32, i32) {
    %c0_i32 = arith.constant 0 : i32
    %c0_i32_0 = arith.constant 0 : i32
    return %arg0, %c0_i32 : i32, i32
  }
  func.func @transform_1(%arg0: i32) -> (i32, i32) {
    %c0_i32 = arith.constant 0 : i32
    %c0_i32_0 = arith.constant 0 : i32
    return %arg0, %c0_i32 : i32, i32
  }
}

</mosaic_0001>

<bundles_post_ra>
// kernel: gelu_pallas.1
= control target key start
LH: loop header
LB: loop body
LE: loop exit
PB: predicated region body
PF: predicated region fallthrough
CT: control target
= control target key end

     0   :  { %s100_s0 = inlined_call_operand.vmem [shape: f32[16,128], index: 0, kind: input, shape index: {}]   ;;  %s101_s1 = inlined_call_operand.vmem [shape: f32[16,128], index: 1, kind: output, shape index: {}]  }
   0x1   :  { %v8_v0 = vld [vmem:[%s100_s0] sm:$0xff]  ;;  %v9_v1 = vld [vmem:[%s100_s0 + $0x8] sm:$0xff] }
   0x2   :  { %v10_v2 = vand.u32 2147483647, %v8_v0  ;;  %v11_v3 = vand.u32 2147483647, %v9_v1  ;;  %vm52_vm0 = vcmp.lt.f32.partialorder %v8_v0, 0.0  ;;  %vm53_vm1 = vcmp.lt.f32.partialorder %v9_v1, 0.0 }
   0x3   :  { %v58_v43 = vmul.f32 0.5, %v8_v0  ;;  %v59_v46 = vmul.f32 0.5, %v9_v1 }
   0x4   :  { %v12_v4 = vmul.f32 0.70710677, %v10_v2  ;;  %v13_v5 = vmul.f32 0.70710677, %v11_v3 }
   0x6   :  { %v14_v6 = vmul.f32 0.3275911, %v12_v4  ;;  %v15_v7 = vmul.f32 0.3275911, %v13_v5  ;;  %v40_v10 = vsub.f32 0.0, %v12_v4  ;;  %v41_v11 = vsub.f32 0.0, %v13_v5 }
   0x8   :  { %v16_v8 = vadd.f32 1.0, %v14_v6  ;;  %v17_v9 = vadd.f32 1.0, %v15_v7  ;;  %v42_v12 = vmul.f32 %v40_v10, %v12_v4  ;;  %v43_v13 = vmul.f32 %v41_v11, %v13_v5 }
   0xa   :  { %70 = vrcp.f32 %v16_v8  ;;  %v44_v17 = vmul.f32 1.442695, %v42_v12  ;;  %v46_v20 = vmul.f32 1.442695, %v43_v13 }
   0xb   :  { %72 = vrcp.f32 %v17_v9 }
   0xc   :  { %74 = vpow2.f32 %v44_v17 }
   0xd   :  { %76 = vpow2.f32 %v46_v20 }
  0x14   :  { %v71_v14 = vpop.eup %70 }
  0x15   :  { %v73_v15 = vpop.eup %72  ;;  %v22_v16 = vmul.f32 1.0614054, %v71_v14 }
  0x16   :  { %v23_v18 = vmul.f32 1.0614054, %v73_v15  ;;  %v75_v33 = vpop.eup %74 }
  0x17   :  { %v24_v19 = vadd.f32 -1.4531521, %v22_v16  ;;  %v77_v35 = vpop.eup %76 }
  0x18   :  { %v25_v21 = vadd.f32 -1.4531521, %v23_v18 }
  0x19   :  { %v26_v22 = vmul.f32 %v71_v14, %v24_v19 }
  0x1a   :  { %v27_v23 = vmul.f32 %v73_v15, %v25_v21 }
  0x1b   :  { %v28_v24 = vadd.f32 1.4214138, %v26_v22 }
  0x1c   :  { %v29_v25 = vadd.f32 1.4214138, %v27_v23 }
  0x1d   :  { %v30_v26 = vmul.f32 %v71_v14, %v28_v24 }
  0x1e   :  { %v31_v27 = vmul.f32 %v73_v15, %v29_v25 }
  0x1f   :  { %v32_v28 = vadd.f32 -0.28449672, %v30_v26 }
  0x20   :  { %v33_v29 = vadd.f32 -0.28449672, %v31_v27 }
  0x21   :  { %v34_v30 = vmul.f32 %v71_v14, %v32_v28 }
  0x22   :  { %v35_v31 = vmul.f32 %v73_v15, %v33_v29 }
  0x23   :  { %v36_v32 = vadd.f32 0.2548296, %v34_v30 }
  0x24   :  { %v37_v34 = vadd.f32 0.2548296, %v35_v31 }
  0x25   :  { %v38_v36 = vmul.f32 %v71_v14, %v36_v32 }
  0x26   :  { %v39_v37 = vmul.f32 %v73_v15, %v37_v34 }
  0x27   :  { %v48_v38 = vmul.f32 %v75_v33, %v38_v36 }
  0x28   :  { %v49_v39 = vmul.f32 %v77_v35, %v39_v37 }
  0x29   :  { %v50_v40 = vsub.f32 1.0, %v48_v38 }
  0x2a   :  { %v51_v41 = vsub.f32 1.0, %v49_v39 }
  0x2b   :  { %v54_v42 = vsub.f32 0.0, %v50_v40 }
  0x2c   :  { %v55_v44 = vsub.f32 0.0, %v51_v41 }
  0x2d   :  { %v56_v45 = vsel %vm52_vm0, %v54_v42, %v50_v40 }
  0x2e   :  { %v60_v47 = vadd.f32 1.0, %v56_v45  ;;  %v57_v48 = vsel %vm53_vm1, %v55_v44, %v51_v41 }
  0x2f   :  { %v61_v49 = vadd.f32 1.0, %v57_v48 }
  0x30   :  { %v62_v50 = vmul.f32 %v60_v47, %v58_v43 }
  0x31   :  { %v63_v51 = vmul.f32 %v61_v49, %v59_v46 }
  0x32   :  { %64 = vst [vmem:[%s101_s1] sm:$0xff] %v62_v50 }
  0x33   :  { %65 = vst [vmem:[%s101_s1 + $0x8] sm:$0xff] %v63_v51 }

</bundles_post_ra>
